<compile_context>
chip_gen: v6e
topology: v6e:2x2x1
jax: 0.10.0
libtpu: 0.0.40
codegen_flags: <defaults>
</compile_context>

<pallas_src>
import math

import jax
import jax.numpy as jnp
from jax.experimental import pallas as pl
from jax.experimental.pallas import tpu as pltpu


def _round_up(n, m):
    return ((n + m - 1) // m) * m


def _relayout_kernel(x_ref, o_ref):
    # Row-major collapse of the trailing dims of this batch tile, done in VMEM.
    o_ref[...] = x_ref[...].reshape(o_ref.shape)


def _copy_kernel(x_ref, o_ref):
    # Pure identity copy (fallback path only).
    o_ref[...] = x_ref[...]


def _padded_row_bytes(tail, itemsize, sublane):
    """Approximate VMEM bytes one batch row of a full-trailing-extent block uses."""
    if not tail:
        return 128 * itemsize
    dims = list(tail)
    dims[-1] = _round_up(dims[-1], 128)          # lane padding
    if len(dims) >= 2:
        dims[-2] = _round_up(dims[-2], sublane)  # sublane padding
    return math.prod(dims) * itemsize


def _choose_batch_tile(b, bytes_per_row, sublane, max_tile_bytes=4 * 1024 * 1024):
    """Pick the batch-tile size tb.

    Legality: tb == b (full extent) or tb a multiple of the sublane packing.
    tb need not divide b; Pallas masks the ragged last block.
    """
    max_rows = max(1, max_tile_bytes // max(bytes_per_row, 1))
    if b <= max_rows:
        if b >= 2 * sublane:
            # >= 2 grid steps so both v7x TensorCores share the copy.
            return min(_round_up((b + 1) // 2, sublane), b)
        return b
    return min(max(sublane, (max_rows // sublane) * sublane), b)


def _pallas_flatten(x, kernel, in_block_tail, tb, b, feat, itemsize):
    ndim = 1 + len(in_block_tail)
    grid = (pl.cdiv(b, tb),)
    return pl.pallas_call(
        kernel,
        out_shape=jax.ShapeDtypeStruct((b, feat), x.dtype),
        grid=grid,
        in_specs=[pl.BlockSpec((tb,) + in_block_tail,
                               lambda i: (i,) + (0,) * (ndim - 1))],
        out_specs=pl.BlockSpec((tb, feat), lambda i: (i, 0)),
        compiler_params=pltpu.CompilerParams(
            dimension_semantics=("parallel",),
        ),
        cost_estimate=pl.CostEstimate(
            flops=0, transcendentals=0,
            bytes_accessed=2 * b * feat * itemsize,
        ),
    )(x)


def flatten(x: jax.Array) -> jax.Array:
    """Equivalent of PyTorch `x.view(x.size(0), -1)` for an NCHW (or any ND) input."""
    if x.ndim == 1:
        x = x[:, None]
    b = x.shape[0]
    rest = x.shape[1:]
    feat = math.prod(rest)
    itemsize = jnp.dtype(x.dtype).itemsize
    sublane = max(8, 32 // itemsize)       # 8 for f32, 16 for bf16, 32 for int8

    out_row = _round_up(feat, 128) * itemsize

    try:
        # Fused path: relayout the ND tile -> (tb, feat) inside the kernel.
        # HBM sees exactly 1 read + 1 write of the payload.
        in_row = _padded_row_bytes(rest, itemsize, sublane)
        tb = _choose_batch_tile(b, in_row + out_row, sublane)
        out = _pallas_flatten(x, _relayout_kernel, rest, tb, b, feat, itemsize)
        return jax.block_until_ready(out)
    except Exception:
        # TODO(synk): fallback pays an extra XLA relayout copy (2x HBM traffic);
        # it only runs if Mosaic rejects the in-kernel reshape on this backend.
        x2d = jnp.reshape(x, (b, feat))
        tb = _choose_batch_tile(b, 2 * out_row, sublane)
        out = _pallas_flatten(x2d, _copy_kernel, (feat,), tb, b, feat, itemsize)
        return jax.block_until_ready(out)


if __name__ == "__main__":
    key = jax.random.PRNGKey(0)
    # Small NCHW conv-feature-map input consistent with the module's usage.
    x = jax.random.normal(key, (2, 4, 16, 16), dtype=jnp.float32)

    out = flatten(x)
    out = jax.block_until_ready(out)

    # Reference: plain JAX reshape (== torch .view semantics).
    ref = jnp.reshape(x, (x.shape[0], -1))
    assert out.shape == (2, 4 * 16 * 16), out.shape
    assert out.dtype == x.dtype
    assert bool(jnp.all(out == ref))

    print("KERNEL_OK")
</pallas_src>

<mosaic_0001>
module attributes {stable_mosaic.version = 11 : i64} {
  func.func @_relayout_kernel(%arg0: i32, %arg1: memref<2x4x16x16xf32, #tpu.memory_space<vmem>>, %arg2: memref<2x1024xf32, #tpu.memory_space<vmem>>) attributes {dimension_semantics = [#tpu.dimension_semantics<parallel>], iteration_bounds = array<i64: 1>, scalar_prefetch = 0 : i64, scratch_operands = 0 : i64, tpu.core_type = #tpu.core_type<tc>, window_params = [{transform_indices = @transform_0, window_bounds = array<i64: 2, 4, 16, 16>}, {transform_indices = @transform_1, window_bounds = array<i64: 2, 1024>}]} {
    %c0 = arith.constant 0 : index
    %c0_0 = arith.constant 0 : index
    %c0_1 = arith.constant 0 : index
    %c0_2 = arith.constant 0 : index
    %0 = vector.load %arg1[%c0, %c0_0, %c0_1, %c0_2] : memref<2x4x16x16xf32, #tpu.memory_space<vmem>>, vector<2x4x16x16xf32>
    %1 = vector.shape_cast %0 : vector<2x4x16x16xf32> to vector<2x1024xf32>
    %c0_3 = arith.constant 0 : index
    %c0_4 = arith.constant 0 : index
    %2 = vector.load %arg2[%c0_3, %c0_4] : memref<2x1024xf32, #tpu.memory_space<vmem>>, vector<2x1024xf32>
    tpu.vector_store %arg2[%c0_3, %c0_4], %1 {strides = array<i32>} : memref<2x1024xf32, #tpu.memory_space<vmem>>, vector<2x1024xf32>,
    return
  }
  func.func @transform_0(%arg0: i32) -> (i32, i32, i32, i32) {
    %c0_i32 = arith.constant 0 : i32
    %c0_i32_0 = arith.constant 0 : i32
    %c0_i32_1 = arith.constant 0 : i32
    %c0_i32_2 = arith.constant 0 : i32
    return %arg0, %c0_i32, %c0_i32_0, %c0_i32_1 : i32, i32, i32, i32
  }
  func.func @transform_1(%arg0: i32) -> (i32, i32) {
    %c0_i32 = arith.constant 0 : i32
    %c0_i32_0 = arith.constant 0 : i32
    return %arg0, %c0_i32 : i32, i32
  }
}

module attributes {stable_mosaic.version = 11 : i64} {
  func.func @_copy_kernel(%arg0: i32, %arg1: memref<2x1024xf32, #tpu.memory_space<vmem>>, %arg2: memref<2x1024xf32, #tpu.memory_space<vmem>>) attributes {dimension_semantics = [#tpu.dimension_semantics<parallel>], iteration_bounds = array<i64: 1>, scalar_prefetch = 0 : i64, scratch_operands = 0 : i64, tpu.core_type = #tpu.core_type<tc>, window_params = [{transform_indices = @transform_0, window_bounds = array<i64: 2, 1024>}, {transform_indices = @transform_1, window_bounds = array<i64: 2, 1024>}]} {
    %c0 = arith.constant 0 : index
    %c0_0 = arith.constant 0 : index
    %0 = vector.load %arg1[%c0, %c0_0] : memref<2x1024xf32, #tpu.memory_space<vmem>>, vector<2x1024xf32>
    %c0_1 = arith.constant 0 : index
    %c0_2 = arith.constant 0 : index
    %1 = vector.load %arg2[%c0_1, %c0_2] : memref<2x1024xf32, #tpu.memory_space<vmem>>, vector<2x1024xf32>
    tpu.vector_store %arg2[%c0_1, %c0_2], %0 {strides = array<i32>} : memref<2x1024xf32, #tpu.memory_space<vmem>>, vector<2x1024xf32>,
    return
  }
  func.func @transform_0(%arg0: i32) -> (i32, i32) {
    %c0_i32 = arith.constant 0 : i32
    %c0_i32_0 = arith.constant 0 : i32
    return %arg0, %c0_i32 : i32, i32
  }
  func.func @transform_1(%arg0: i32) -> (i32, i32) {
    %c0_i32 = arith.constant 0 : i32
    %c0_i32_0 = arith.constant 0 : i32
    return %arg0, %c0_i32 : i32, i32
  }
}

</mosaic_0001>

<bundles_post_ra>
// kernel: tpu_custom_call.1
= control target key start
LH: loop header
LB: loop body
LE: loop exit
PB: predicated region body
PF: predicated region fallthrough
CT: control target
= control target key end

     0   :  { %6 = vsyncpa [#allocation3], 0  ;;  %s104_s0 = inlined_call_operand.hbm [shape: f32[2,1024], index: 0, kind: input, shape index: {}]   ;;  %s105_s1 = inlined_call_operand.hbm [shape: f32[2,1024], index: 1, kind: output, shape index: {}]  }
   0x1   :  { %7 = vsyncpa [#allocation4], 0  ;;  %s86_s6 = smov [#allocation2]  }
   0x2   :  { %s14_s7 = sshll.u32 %s86_s6, 4  ;;  %s15_s7 = int_to_ptr.vmem [resolvable:$true] %s14_s7 }
   0x3   :  { %s50_s8 = scalar_lea.vmem %s15_s7, 256  ;;  %p55_p1 = scmp.lt.s32.totalorder %s15_s7, %s15_s7 }
   0x4   :  { %p51_p0 = scmp.ne.s32.totalorder %s15_s7, %s50_s8  ;;  %p56_p2 = scmp.lt.s32.totalorder %s50_s8, %s50_s8 }
   0x6   :  { %p57_p3 = por %p56_p2, %p55_p1 }
   0x8   :  { %p58_p4 = pnand %p57_p3, %p51_p0 }
   0xa   :  { %61 = shalt.err (!%p58_p4)
}
   0xb   :  { %17 = dma.hbm_to_vmem [thread:$0]  %s104_s0, 256, %s15_s7, [#allocation3]  }
   0xc   :  { %82 = dma.done.wait [#allocation3], 256  }
   0xd   :  { %83 = vsyncadd [#allocation3], 4294967040  ;;  %s87_s11 = smov [#allocation5]   ;;  %v21_v0 = vld [vmem:[#allocation2] sm:$0xff]  ;;  %v22_v1 = vld [vmem:[#allocation2 + $0x8] sm:$0xff] }
   0xe   :  { %s31_s12 = sshll.u32 %s87_s11, 4  ;;  %23 = vst [vmem:[#allocation5] sm:$0xff] %v21_v0  ;;  %24 = vst [vmem:[#allocation5 + $0x8] sm:$0xff] %v22_v1  ;;  %s32_s12 = int_to_ptr.vmem [resolvable:$true] %s31_s12 }
   0xf   :  { %s62_s13 = scalar_lea.vmem %s32_s12, 256  ;;  %p67_p6 = scmp.lt.s32.totalorder %s32_s12, %s32_s12 }
  0x10   :  { %p63_p5 = scmp.ne.s32.totalorder %s32_s12, %s62_s13  ;;  %p68_p7 = scmp.lt.s32.totalorder %s62_s13, %s62_s13 }
  0x12   :  { %p69_p8 = por %p68_p7, %p67_p6 }
  0x14   :  { %p70_p9 = pnand %p69_p8, %p63_p5 }
  0x16   :  { %73 = shalt.err (!%p70_p9)
}
  0x17   :  { %34 = dma.vmem_to_hbm [thread:$0]  %s32_s12, 256, %s105_s1, [#allocation4]  }
  0x18   :  { %84 = dma.done.wait [#allocation4], 256  }
  0x19   :  { %85 = vsyncadd [#allocation4], 4294967040 }
  0x1a   :  { %38 = vsyncpa [#allocation3], 1 }
  0x1b   :  { %39 = vsyncpa [#allocation4], 1 }

</bundles_post_ra>
